<compile_context>
chip_gen: v7x
topology: tpu7x:2x2x1
jax: 0.10.0
libtpu: 0.0.40
codegen_flags: <defaults>
</compile_context>

<pallas_src>
import functools

import jax
import jax.numpy as jnp
import numpy as np
from jax.experimental import pallas as pl
from jax.experimental.pallas import tpu as pltpu


def _upconv_bn_relu_kernel(x_ref, w_ref, shift_ref, o_ref, *,
                           nb, kh, kw, c_in, c_out, wp, sd, use_act):
    # x_ref:     (nb, c_in, f_pad)     flattened dilated+padded input frames (f32)
    # w_ref:     (kw*c_out, kh*c_in)   bf16 weights: row = j*c_out + o, col = i*c_in + c
    # shift_ref: (c_out, 1)            f32 fused conv-bias + BN shift
    # o_ref:     (nb, c_out, sd)       sd = h_out * wp (wrap/junk columns cropped outside)
    sdw = sd + kw - 1
    w = w_ref[...]                     # (kw*c_out, kh*c_in) bf16
    shift = shift_ref[...]             # (c_out, 1) f32

    for b in range(nb):                # static unroll; nb is 1 or the (small) full batch
        xv = x_ref[b]                                                  # (c_in, f_pad)
        # Column matrix with K ordered (row-tap i, channel c): each tap-row contributes a
        # contiguous (c_in, sdw) slab -> built in registers, no scratch / masked stores.
        slabs = [jax.lax.slice(xv, (0, i * wp), (c_in, i * wp + sdw)) for i in range(kh)]
        col = jnp.concatenate(slabs, axis=0).astype(jnp.bfloat16)      # (kh*c_in, sdw)

        # Single MXU pass: bf16 x bf16 -> f32 accumulate (no Precision.HIGHEST multi-pass).
        p = jnp.dot(w, col, preferred_element_type=jnp.float32)        # (kw*c_out, sdw)

        # Apply the kw lane shifts on the small post-matmul result instead of inside the
        # im2col build:  out[o, m] = sum_j p[j*c_out + o, m + j].
        acc = p[0:c_out, 0:sd]
        for j in range(1, kw):
            acc = acc + p[j * c_out:(j + 1) * c_out, j:j + sd]

        y = acc + shift                                                # per-channel shift
        if use_act:
            y = jnp.maximum(y, 0.0)                                    # ReLU
        # Dropout(0.5): identity in eval mode.
        o_ref[b] = y.astype(o_ref.dtype)


def _single_tensorcore_chip():
    """True for single-TC generations (v5e/v6e): collapse the batch to one grid step."""
    try:
        kind = jax.devices()[0].device_kind.lower()
    except Exception:
        return False
    return any(t in kind for t in
               ("v5e", "v5 lite", "v5litepod", "v6e", "v6 lite", "v6litepod"))


def upconv_bn_relu(x_nchw, w_t, bias, gamma, beta, running_mean, running_var, *,
                   padding, stride, eps=1e-5, use_act=True):
    """Eval-mode forward of ConvTranspose2d + BatchNorm2d + ReLU (+ Dropout identity).

    x_nchw: (N, Cin, H, W);  w_t: PyTorch ConvTranspose2d weight (Cin, Cout, KH, KW).
    Returns (N, Cout, Hout, Wout) in NCHW.
    """
    n, c_in, h, w = x_nchw.shape
    _, c_out, kh, kw = w_t.shape

    pe_h = kh - 1 - padding
    pe_w = kw - 1 - padding
    assert pe_h >= 0 and pe_w >= 0, "kernel_size must be > padding for this formulation"

    h_out = (h - 1) * stride - 2 * padding + kh
    w_out = (w - 1) * stride - 2 * padding + kw
    hp = (h - 1) * stride + 1 + 2 * pe_h          # = h_out + kh - 1
    wp = (w - 1) * stride + 1 + 2 * pe_w          # = w_out + kw - 1
    sd = h_out * wp                               # flattened frame length per image

    # Extra zero rows so the deepest tap read (sd-1 + (kh-1)*wp + kw-1) stays in range.
    extra_rows = -(-(kw - 1) // wp)
    f_pad = (hp + extra_rows) * wp

    # ONE pad op: stride-dilation + (k-1-p) edge pad + flat tail rows, then a free reshape.
    x_p = jax.lax.pad(
        x_nchw.astype(jnp.float32), jnp.zeros((), jnp.float32),
        ((0, 0, 0), (0, 0, 0),
         (pe_h, pe_h + extra_rows, stride - 1),
         (pe_w, pe_w, stride - 1)))               # (n, c_in, hp + extra_rows, wp)
    x_f = x_p.reshape(n, c_in, f_pad)

    # Equivalent direct-conv weight: flip spatial taps, swap in/out channel axes.
    w_dir = jnp.transpose(jnp.flip(w_t, axis=(2, 3)), (1, 0, 2, 3)).astype(jnp.float32)
    # Fold eval-mode BN scale (and conv bias) into weight / shift.
    scale = (gamma / jnp.sqrt(running_var + eps)).astype(jnp.float32)       # (c_out,)
    shift = (beta + (bias - running_mean) * scale).astype(jnp.float32)      # (c_out,)
    # Pack to (kw*c_out, kh*c_in): row = j*c_out + o, col = i*c_in + c; BN scale folded;
    # bf16 so the contraction is a single MXU pass (f32 accumulation in the kernel).
    w_mat = ((w_dir * scale[:, None, None, None])
             .transpose(3, 0, 2, 1)
             .reshape(kw * c_out, kh * c_in)
             .astype(jnp.bfloat16))
    shift2 = shift.reshape(c_out, 1)

    # Batch-per-grid-step: single-TC chips take the whole batch in one step (no per-step
    # grid overhead); multi-TC chips keep a parallel batch grid (one image per core).
    nb = n if _single_tensorcore_chip() else 1
    grid = (n // nb,)

    kernel = functools.partial(_upconv_bn_relu_kernel, nb=nb, kh=kh, kw=kw, c_in=c_in,
                               c_out=c_out, wp=wp, sd=sd, use_act=use_act)

    out_f = pl.pallas_call(
        kernel,
        out_shape=jax.ShapeDtypeStruct((n, c_out, sd), jnp.float32),
        grid=grid,
        in_specs=[
            pl.BlockSpec((nb, c_in, f_pad), lambda g: (g, 0, 0)),
            pl.BlockSpec((kw * c_out, kh * c_in), lambda g: (0, 0)),
            pl.BlockSpec((c_out, 1), lambda g: (0, 0)),
        ],
        out_specs=pl.BlockSpec((nb, c_out, sd), lambda g: (g, 0, 0)),
        compiler_params=pltpu.CompilerParams(dimension_semantics=("parallel",)),
    )(x_f, w_mat, shift2)

    # (n, c_out, h_out*wp) -> (n, c_out, h_out, wp) is a free reshape (row-major); crop the
    # kw-1 wrap columns per row.  Output is already NCHW -- no transpose needed.
    return out_f.reshape(n, c_out, h_out, wp)[:, :, :, :w_out]


def _reference_np(x, w_t, bias, gamma, beta, mean, var, *, padding, stride, eps=1e-5,
                  use_act=True):
    """Independent numpy reference: direct scatter transposed conv + eval BN + ReLU."""
    x = np.asarray(x, np.float64)
    w_t = np.asarray(w_t, np.float64)
    n, c_in, h, w = x.shape
    _, c_out, kh, kw = w_t.shape
    h_full = (h - 1) * stride + kh
    w_full = (w - 1) * stride + kw
    y = np.zeros((n, c_out, h_full, w_full), np.float64)
    for p in range(kh):
        for q in range(kw):
            contrib = np.einsum("ncij,co->noij", x, w_t[:, :, p, q])
            y[:, :, p:p + (h - 1) * stride + 1:stride,
                    q:q + (w - 1) * stride + 1:stride] += contrib
    y = y[:, :, padding:h_full - padding, padding:w_full - padding]
    y = y + np.asarray(bias, np.float64)[None, :, None, None]
    y = (y - np.asarray(mean, np.float64)[None, :, None, None]) / np.sqrt(
        np.asarray(var, np.float64)[None, :, None, None] + eps)
    y = y * np.asarray(gamma, np.float64)[None, :, None, None] + \
        np.asarray(beta, np.float64)[None, :, None, None]
    if use_act:
        y = np.maximum(y, 0.0)
    return y


if __name__ == "__main__":
    # UpConvBnRelu(in_size=4, out_size=8, kernel_size=4, padding=1, stride=2): 16x16 -> 32x32
    N, C_IN, H, W = 2, 4, 16, 16
    C_OUT, K, PAD, STRIDE = 8, 4, 1, 2

    key = jax.random.PRNGKey(0)
    kx, kw_, kb, kg, kbe, km, kv = jax.random.split(key, 7)

    x = jax.random.normal(kx, (N, C_IN, H, W), dtype=jnp.float32)
    # PyTorch ConvTranspose2d weight layout: (in_channels, out_channels, KH, KW)
    w = jax.random.normal(kw_, (C_IN, C_OUT, K, K), dtype=jnp.float32) * 0.1
    b = jax.random.normal(kb, (C_OUT,), dtype=jnp.float32) * 0.1
    gamma = 1.0 + 0.1 * jax.random.normal(kg, (C_OUT,), dtype=jnp.float32)
    beta = 0.1 * jax.random.normal(kbe, (C_OUT,), dtype=jnp.float32)
    running_mean = 0.1 * jax.random.normal(km, (C_OUT,), dtype=jnp.float32)
    running_var = jnp.abs(jax.random.normal(kv, (C_OUT,), dtype=jnp.float32)) + 0.5

    out = upconv_bn_relu(x, w, b, gamma, beta, running_mean, running_var,
                         padding=PAD, stride=STRIDE)
    out = jax.block_until_ready(out)

    ref = _reference_np(x, w, b, gamma, beta, running_mean, running_var,
                        padding=PAD, stride=STRIDE)
    # Tolerance reflects bf16 MXU operands (per perf review) with f32 accumulation over
    # K = kh*kw*c_in = 64; any indexing/weight-layout bug would produce O(1) errors.
    np.testing.assert_allclose(np.asarray(out), ref, rtol=3e-2, atol=3e-2)

    print("KERNEL_OK")
</pallas_src>

<mosaic_0001>
module attributes {stable_mosaic.version = 11 : i64} {
  func.func @_upconv_bn_relu_kernel(%arg0: i32, %arg1: memref<1x4x1260xf32, #tpu.memory_space<vmem>>, %arg2: memref<32x16xbf16, #tpu.memory_space<vmem>>, %arg3: memref<8x1xf32, #tpu.memory_space<vmem>>, %arg4: memref<1x8x1120xf32, #tpu.memory_space<vmem>>) attributes {dimension_semantics = [#tpu.dimension_semantics<parallel>], iteration_bounds = array<i64: 2>, scalar_prefetch = 0 : i64, scratch_operands = 0 : i64, tpu.core_type = #tpu.core_type<tc>, window_params = [{transform_indices = @transform_0, window_bounds = array<i64: 1, 4, 1260>}, {pipeline_mode = #tpu.pipeline_mode<synchronous>, transform_indices = @transform_1, window_bounds = array<i64: 32, 16>}, {pipeline_mode = #tpu.pipeline_mode<synchronous>, transform_indices = @transform_2, window_bounds = array<i64: 8, 1>}, {transform_indices = @transform_3, window_bounds = array<i64: 1, 8, 1120>}]} {
    %c0 = arith.constant 0 : index
    %c0_0 = arith.constant 0 : index
    %0 = vector.load %arg2[%c0, %c0_0] : memref<32x16xbf16, #tpu.memory_space<vmem>>, vector<32x16xbf16>
    %c0_1 = arith.constant 0 : index
    %c0_2 = arith.constant 0 : index
    %1 = vector.load %arg3[%c0_1, %c0_2] : memref<8x1xf32, #tpu.memory_space<vmem>>, vector<8x1xf32>
    %c0_3 = arith.constant 0 : index
    %c0_4 = arith.constant 0 : index
    %c0_5 = arith.constant 0 : index
    %2 = vector.load %arg1[%c0_3, %c0_4, %c0_5] : memref<1x4x1260xf32, #tpu.memory_space<vmem>>, vector<1x4x1260xf32>
    %3 = vector.shape_cast %2 : vector<1x4x1260xf32> to vector<4x1260xf32>
    %4 = vector.extract_strided_slice %3 {offsets = [0, 0], sizes = [4, 1123], strides = [1, 1]} : vector<4x1260xf32> to vector<4x1123xf32>
    %5 = vector.extract_strided_slice %3 {offsets = [0, 35], sizes = [4, 1123], strides = [1, 1]} : vector<4x1260xf32> to vector<4x1123xf32>
    %6 = vector.extract_strided_slice %3 {offsets = [0, 70], sizes = [4, 1123], strides = [1, 1]} : vector<4x1260xf32> to vector<4x1123xf32>
    %7 = vector.extract_strided_slice %3 {offsets = [0, 105], sizes = [4, 1123], strides = [1, 1]} : vector<4x1260xf32> to vector<4x1123xf32>
    %8 = tpu.concatenate %4, %5, %6, %7 in 0 : vector<4x1123xf32>, vector<4x1123xf32>, vector<4x1123xf32>, vector<4x1123xf32> -> vector<16x1123xf32>
    %9 = arith.truncf %8 : vector<16x1123xf32> to vector<16x1123xbf16>
    %cst = arith.constant dense<0.000000e+00> : vector<32x1123xf32>
    %10 = tpu.matmul %0, %9, %cst {dimension_numbers = #tpu.dot_dimension_numbers<[1], [0], [0], [1], [0, 0, 1, 1], [], []>} : vector<32x16xbf16>, vector<16x1123xbf16>, vector<32x1123xf32> -> vector<32x1123xf32>
    %11 = vector.extract_strided_slice %10 {offsets = [0, 0], sizes = [8, 1120], strides = [1, 1]} : vector<32x1123xf32> to vector<8x1120xf32>
    %12 = vector.extract_strided_slice %10 {offsets = [8, 1], sizes = [8, 1120], strides = [1, 1]} : vector<32x1123xf32> to vector<8x1120xf32>
    %13 = arith.addf %11, %12 : vector<8x1120xf32>
    %14 = vector.extract_strided_slice %10 {offsets = [16, 2], sizes = [8, 1120], strides = [1, 1]} : vector<32x1123xf32> to vector<8x1120xf32>
    %15 = arith.addf %13, %14 : vector<8x1120xf32>
    %16 = vector.extract_strided_slice %10 {offsets = [24, 3], sizes = [8, 1120], strides = [1, 1]} : vector<32x1123xf32> to vector<8x1120xf32>
    %17 = arith.addf %15, %16 : vector<8x1120xf32>
    %18 = vector.broadcast %1 : vector<8x1xf32> to vector<8x1120xf32>
    %19 = arith.addf %17, %18 : vector<8x1120xf32>
    %cst_6 = arith.constant 0.000000e+00 : f32
    %20 = vector.broadcast %cst_6 : f32 to vector<8x1120xf32>
    %21 = arith.maximumf %19, %20 : vector<8x1120xf32>
    %c0_7 = arith.constant 0 : index
    %c0_8 = arith.constant 0 : index
    %c0_9 = arith.constant 0 : index
    %22 = vector.load %arg4[%c0_7, %c0_8, %c0_9] : memref<1x8x1120xf32, #tpu.memory_space<vmem>>, vector<1x8x1120xf32>
    %23 = vector.shape_cast %22 : vector<1x8x1120xf32> to vector<8x1120xf32>
    %24 = vector.shape_cast %21 : vector<8x1120xf32> to vector<1x8x1120xf32>
    tpu.vector_store %arg4[%c0_7, %c0_8, %c0_9], %24 {strides = array<i32>} : memref<1x8x1120xf32, #tpu.memory_space<vmem>>, vector<1x8x1120xf32>,
    return
  }
  func.func @transform_0(%arg0: i32) -> (i32, i32, i32) {
    %c0_i32 = arith.constant 0 : i32
    %c0_i32_0 = arith.constant 0 : i32
    %c0_i32_1 = arith.constant 0 : i32
    return %arg0, %c0_i32, %c0_i32_0 : i32, i32, i32
  }
  func.func @transform_1(%arg0: i32) -> (i32, i32) {
    %c0_i32 = arith.constant 0 : i32
    %c0_i32_0 = arith.constant 0 : i32
    %c0_i32_1 = arith.constant 0 : i32
    return %c0_i32, %c0_i32_0 : i32, i32
  }
  func.func @transform_2(%arg0: i32) -> (i32, i32) {
    %c0_i32 = arith.constant 0 : i32
    %c0_i32_0 = arith.constant 0 : i32
    %c0_i32_1 = arith.constant 0 : i32
    return %c0_i32, %c0_i32_0 : i32, i32
  }
  func.func @transform_3(%arg0: i32) -> (i32, i32, i32) {
    %c0_i32 = arith.constant 0 : i32
    %c0_i32_0 = arith.constant 0 : i32
    %c0_i32_1 = arith.constant 0 : i32
    return %arg0, %c0_i32, %c0_i32_0 : i32, i32, i32
  }
}

</mosaic_0001>

<bundles_post_ra>
// kernel: tpu_custom_call.1
= control target key start
LH: loop header
LB: loop body
LE: loop exit
PB: predicated region body
PF: predicated region fallthrough
CT: control target
= control target key end

     0   :  { %8 = vsyncpa [#allocation3], 0  ;;  %s1636_s0 = inlined_call_operand.hbm [shape: f32[2,4,1260], index: 0, kind: input, shape index: {}]   ;;  %s1637_s1 = inlined_call_operand.vmem [shape: bf16[32,16], index: 1, kind: input, shape index: {}]   ;;  %s1638_s2 = inlined_call_operand.vmem [shape: f32[8,1], index: 2, kind: input, shape index: {}]   ;;  %s1639_s3 = inlined_call_operand.hbm [shape: f32[2,8,1120], index: 3, kind: output, shape index: {}]  }
   0x1   :  { %10 = vsyncpa [#allocation3 + $0x1], 0 }
   0x2   :  { %11 = vsyncpa [#allocation4], 0 }
   0x3   :  { %13 = vsyncpa [#allocation4 + $0x1], 0  ;;  %s1212_s12 = smov 0   ;;  %s1214_s13 = smov 0  }
   0x4   :  { %s1216_s14 = smov 0   ;;  %s1218_s15 = smov 0  }
   0x5 LB: > { %s1233_s16 = sadd.s32 4294967295, %s1181_s15   ;;  %s920_s17 = sadd.s32 4294967294, %s1181_s15   ;;  %s1181_s15 = sphi %s1218_s15, %s1653_s15   ;;  %s1177_s14 = sphi %s1216_s14, %s1652_s14   ;;  %s1173_s13 = sphi %s1214_s13, %s1651_s13   ;;  %s1169_s12 = sphi %s1212_s12, %s1650_s12  }
   0x6   : > { %s1237_s18 = sadd.s32 1, %s1181_s15   ;;  %s26_s19 = sadd.s32 1, %s1177_s14 }
   0x7   : > { %s23_s20 = ssub.s32 %s1181_s15, %s1237_s18  ;;  %p33_p0 = scmp.ne.s32.totalorder %s1177_s14, %s1173_s13 }
   0x8   : > { %p24_p1 = scmp.eq.s32.totalorder %s23_s20, 0  ;;  %p34_p2 = scmp.eq.s32.totalorder %s1181_s15, 0 }
   0x9   : > { %p39_p3 = scmp.ne.s32.totalorder %s1173_s13, %s1169_s12  ;;  %p40_p4 = scmp.eq.s32.totalorder %s1233_s16, 0 }
   0xa   : > { %s1249_s21 = scalar_select %p24_p1, %s1177_s14, %s26_s19  }
   0xb   : > { %p35_p5 = por %p34_p2, %p33_p0  ;;  %p1251_p6 = por %p40_p4, %p39_p3 }
   0xc   : > { %p105_p7 = scmp.eq.s32.totalorder %s1233_s16, 1  ;;  %p111_p8 = scmp.eq.s32.totalorder %s920_s17, 1 }
   0xd   : > { %p966_p10 = scmp.lt.s32.totalorder %s1181_s15, 2  ;;  %s137_s25 = sand.u32 1, %s1177_s14  }
   0xe   : > { %p1258_p11 = por %p105_p7, %p33_p0  ;;  %p1262_p12 = por %p111_p8, %p39_p3 }
   0xf   : > { %s950_s26 = smul.u32 640, %s1181_s15  ;;  %p1273_p13 = pnand %p966_p10, %p35_p5 }
  0x10   : > { %s1642_s23 = scalar_select %p1258_p11, 1, 0 }
  0x11   : > { %s1643_s24 = scalar_select %p1262_p12, 1, 0 }
  0x12   : > { %s949_s27 = smul.u32 40, %s137_s25  ;;  %s1271_s30 = scalar_lea.hbm %s1636_s0, %s950_s26 }
  0x13   : > { %s138_s7 = scalar_lea.sflag [#allocation3], %s137_s25  ;;  %s1085_s8 = scalar_lea.hbm %s1271_s30, 640 }
  0x14   : > { %s141_s5 = scalar_lea.vmem [#allocation2], %s949_s27  ;;  %p1086_p2 = scmp.ne.s32.totalorder %s1271_s30, %s1085_s8 }
  0x15   : > { %s149_s6 = sshll.u32 %s141_s5, 4  ;;  %p1087_p3 = pneg %p1273_p13  ;;  %s1278_s6 = int_to_ptr.vmem [resolvable:$true] %s149_s6 }
  0x16   : > { %s1090_s11 = scalar_lea.hbm %s1636_s0, 1280  ;;  %p1091_p7 = scmp.lt.u32.totalorder %s1271_s30, %s1636_s0 }
  0x17   : > { %p1088_p4 = pnand %p1087_p3, %p1086_p2  ;;  %p1092_p8 = scmp.lt.u32.totalorder %s1090_s11, %s1085_s8 }
  0x18   : > { %p1094_p9 = scmp.lt.u32.totalorder %s1085_s8, %s1271_s30 }
  0x19   : > { %p1089_p5 = pneg %p1088_p4  ;;  %p1093_p10 = por %p1092_p8, %p1091_p7 }
  0x1b   : > { %p1095_p0 = por %p1094_p9, %p1093_p10 }
  0x1d   : > { %p1096_p1 = pnand %p1095_p0, %p1089_p5 }
  0x1f   : > { %1099 = shalt.err (!%p1096_p1)
}
  0x20   : > { %s1100_s20 = scalar_lea.vmem %s1278_s6, 640  ;;  %s1183_s25 = smov [#allocation2]  }
  0x21   : > { %p1101_p2 = scmp.ne.s32.totalorder %s1278_s6, %s1100_s20  ;;  %s1105_s26 = sshll.u32 %s1183_s25, 4  ;;  %s1106_s26 = int_to_ptr.vmem [resolvable:$false] %s1105_s26 }
  0x22   : > { %s1107_s27 = scalar_lea.vmem %s1106_s26, 1280  ;;  %p1108_p11 = scmp.lt.s32.totalorder %s1278_s6, %s1106_s26 }
  0x23   : > { %p1103_p4 = pnand %p1101_p2, %p1087_p3  ;;  %p1109_p7 = scmp.lt.s32.totalorder %s1107_s27, %s1100_s20 }
  0x25   : > { %p1104_p12 = pneg %p1103_p4  ;;  %p1110_p8 = por %p1109_p7, %p1108_p11 }
  0x27   : > { %p1111_p9 = pnand %p1110_p8, %p1104_p12 }
  0x29   : > { %1114 = shalt.err (!%p1111_p9)
}
  0x2a   : > { %961 = dma.hbm_to_vmem [thread:$0]  (!%p1273_p13), %s1271_s30, 640, %s1278_s6, %s138_s7  }
  0x2b   : > { %p1645_p0 = scmp.lt.s32.totalorder %s1181_s15, 3  ;;  %p1646_p1 = scmp.ge.s32.totalorder %s1181_s15, 1 }
  0x2d   : > { %p155_p3 = pnand %p1646_p1, %p1645_p0 }
  0x2e   : > { %s1311_s28 = sand.u32 (!%p155_p3), 1, %s1173_s13  }
  0x2f   : > { %158 = sbr.rel (%p155_p3) target bundleno = 603 (0x25b), region = 32  ;;  %s161_s5 = scalar_lea.sflag (!%p155_p3), [#allocation3], %s1311_s28 }
  0x30   : > { %s951_s29 = smul.u32 (!%p155_p3), 40, %s1311_s28 }
  0x32   : > { %s1315_s8 = scalar_lea.vmem (!%p155_p3), [#allocation2], %s951_s29 }
  0x36   : > { %1160 = dma.done.wait (%p1251_p6), %s161_s5, 640  }
  0x37   : > { %1162 = vsyncadd (%p1251_p6), %s161_s5, 4294966656  ;;  %v1322_v0 = vld [vmem:[%s1315_s8] sm:$0xff]  ;;  %v1325_v1 = vld [vmem:[%s1315_s8 + $0x8] sm:$0xff]  ;;  %s1184_s22 = smov 23   ;;  %s1185_s30 = smov 93   ;;  %v1187_v14 = vmov 0  }
  0x38   : > { %v212_v2 = vcombine.low %v1325_v1, %v1325_v1  ;;  %v211_v3 = vcombine.low %v1322_v0, %v1322_v0  ;;  %v1333_v4 = vcombine.high %v1322_v0, %v1322_v0  ;;  %v1343_v8 = vcombine.high %v1325_v1, %v1325_v1  ;;  %v1346_v9 = vld [vmem:[%s1315_s8 + $0x10] sm:$0xff]  ;;  %s1186_s4 = smov 58   ;;  %v1359_v13 = vld [vmem:[%s1315_s8 + $0x18] sm:$0xff]  ;;  %411 = vmatprep.mubr.bf16.mxu0 %v1187_v14  ;;  %v1375_v19 = vld [vmem:[%s1315_s8 + $0x20] sm:$0xff]  ;;  %s1188_s19 = smov 127  }
  0x39   : > { %v1350_v10 = vcombine.high %v1346_v9, %v1346_v9  ;;  %v213_v12 = vcombine.low %v1346_v9, %v1346_v9  ;;  %464 = vmatprep.mubr.bf16.mxu1 %v1187_v14  ;;  %1072 = vset.pattern.permute.xlu0 %v1187_v14  ;;  %v214_v17 = vcombine.low %v1359_v13, %v1359_v13  ;;  %v192_v26 = vld [vmem:[%s1638_s2] sm:$0xff]  ;;  %vm315_vm0 = vcmask 187392   ;;  %s1189_s20 = smov 126   ;;  %s1190_s25 = smov 125  }
  0x3a   : > { %v1017_v5 = vpack.i.bf16 %v212_v2, %v1322_v0  ;;  %v1022_v6 = vpack.i.bf16 %v1325_v1, %v211_v3  ;;  %v1012_v7 = vpack.i.bf16 %v1325_v1, %v1333_v4  ;;  %v1027_v11 = vpack.i.bf16 %v1343_v8, %v1322_v0  ;;  %v1418_v62 = vld [vmem:[%s1637_s1] sm:$0xff]   ;;  %s952_s26 = smul.u32 72, %s1311_s28  ;;  %p1647_p11 = scmp.ne.s32.totalorder %s1642_s23, 0 }
  0x3b   : > { %v1042_v15 = vpack.i.bf16 %v1350_v10, %v1346_v9  ;;  %v1037_v16 = vpack.i.bf16 %v1346_v9, %v213_v12  ;;  %v1052_v18 = vpack.i.bf16 %v1359_v13, %v214_v17  ;;  %v1381_v20 = vcombine.high %v1359_v13, %v1359_v13  ;;  %s953_s29 = smul.u32 1152, %s1233_s16  ;;  %s836_s16 = scalar_lea.sflag [#allocation4], %s1311_s28 }
  0x3c   : > { %1018 = vrot.lane.b32.xlu1 %v1017_v5, %s1184_s22  ;;  %1008 = vrot.lane.b32.xlu0 %v1017_v5, %s1185_s30  ;;  %v215_v21 = vcombine.low %v1375_v19, %v1375_v19  ;;  %v255_v25 = vcombine.high %v1375_v19, %v1375_v19  ;;  %vm236_vm1 = vcmask 760832   ;;  %vm276_vm2 = vcmask 474112   ;;  %s1547_s27 = scalar_lea.vmem [#allocation5], %s952_s26  ;;  %s1191_s6 = smov [#allocation5]  }
  0x3d   : > { %v1062_v22 = vpack.i.bf16 %v1375_v19, %v1381_v20  ;;  %vm334_vm3 = vcmask 1043456   ;;  %vm372_vm4 = vcmask 130048   ;;  %vm667_vm5 = vcmask 1039360   ;;  %s850_s5 = sshll.u32 %s1547_s27, 4  ;;  %s1119_s7 = sshll.u32 %s1191_s6, 4  ;;  %s1592_s5 = int_to_ptr.vmem [resolvable:$true] %s850_s5  ;;  %s1120_s7 = int_to_ptr.vmem [resolvable:$false] %s1119_s7 }
  0x3e   : > { %v1057_v23 = vpack.i.bf16 %v1375_v19, %v215_v21  ;;  %v1067_v24 = vpack.i.bf16 %v215_v21, %v1359_v13  ;;  %vm721_vm6 = vcmask 1031168   ;;  %vm775_vm7 = vcmask 1022976   ;;  %s1121_s9 = scalar_lea.vmem %s1120_s7, 2304  ;;  %p1122_p5 = scmp.lt.s32.totalorder %s1592_s5, %s1120_s7 }
  0x3f   : > { %vm833_vm8 = vcmask 785408  }
  0x40   : > { %1023 = vrot.lane.b32.xlu1 %v1022_v6, %s1185_s30  ;;  %1013 = vrot.lane.b32.xlu0 %v1012_v7, %s1186_s4 }
  0x44   : > { %1033 = vrot.lane.b32.xlu1 %v1022_v6, %s1184_s22  ;;  %1028 = vrot.lane.b32.xlu0 %v1027_v11, %s1186_s4 }
  0x48   : > { %1043 = vrot.lane.b32.xlu1 %v1042_v15, %s1186_s4  ;;  %1038 = vrot.lane.b32.xlu0 %v1037_v16, %s1185_s30 }
  0x4c   : > { %1053 = vrot.lane.b32.xlu1 %v1052_v18, %s1185_s30  ;;  %1048 = vrot.lane.b32.xlu0 %v1037_v16, %s1184_s22 }
  0x50   : > { %307 = vrot.lane.b32.xlu1 %v214_v17, %s1184_s22  ;;  %268 = vrot.lane.b32.xlu0 %v1359_v13, %s1186_s4 }
  0x54   : > { %1063 = vrot.lane.b32.xlu1 %v1062_v22, %s1186_s4  ;;  %1058 = vrot.lane.b32.xlu0 %v1057_v23, %s1185_s30  ;;  %s1590_s30 = scalar_lea.hbm %s1639_s3, %s953_s29 }
  0x58   : > { %1068 = vrot.lane.b32.xlu0 %v1067_v24, %s1184_s22  ;;  %274 = vrot.lane.b32.xlu1 %v255_v25, %s1186_s4  ;;  %s1115_s4 = scalar_lea.vmem %s1592_s5, 1152 }
  0x59   : > { %p1116_p6 = scmp.ne.s32.totalorder %s1592_s5, %s1115_s4  ;;  %p1123_p10 = scmp.lt.s32.totalorder %s1121_s9, %s1115_s4 }
  0x5b   : > { %p1117_p12 = pnand %p1116_p6, %p1647_p11  ;;  %p1124_p2 = por %p1123_p10, %p1122_p5 }
  0x5c   : > { %313 = vrot.lane.b32.xlu0 %v1375_v19, %s1184_s22 }
  0x5d   : > { %p1118_p13 = pneg %p1117_p12 }
  0x5f   : > { %p1125_p4 = pnand %p1124_p2, %p1118_p13 }
  0x60   : > { %804 = vperm.xlu0 %1072, %v192_v26  }
  0xae   : > { %v1019_v27 = vpop.permute.xlu1 %1018  ;;  %v1009_v28 = vpop.permute.xlu0 %1008 }
  0xaf   : > { %v1021_v29 = vunpack.i.h.bf16 %v1019_v27  ;;  %v1020_v30 = vunpack.i.l.bf16 %v1019_v27  ;;  %v1011_v31 = vunpack.i.h.bf16 %v1009_v28  ;;  %v1010_v32 = vunpack.i.l.bf16 %v1009_v28 }
  0xb1   : > { %v317_v37 = vsel %vm315_vm0, %v1020_v30, %v1021_v29  ;;  %v238_v39 = vsel %vm236_vm1, %v1010_v32, %v1011_v31 }
  0xb2   : > { %v1024_v33 = vpop.permute.xlu1 %1023  ;;  %v1014_v34 = vpop.permute.xlu0 %1013  ;;  %v336_v46 = vsel %vm334_vm3, %v1333_v4, %v238_v39 }
  0xb3   : > { %v1016_v35 = vunpack.i.h.bf16 %v1014_v34  ;;  %v1015_v36 = vunpack.i.l.bf16 %v1014_v34  ;;  %v1025_v38 = vunpack.i.l.bf16 %v1024_v33  ;;  %v1026_v53 = vunpack.i.h.bf16 %v1024_v33 }
  0xb5   : > { %v278_v40 = vsel %vm276_vm2, %v1015_v36, %v1016_v35  ;;  %v237_v48 = vsel %vm236_vm1, %v1025_v38, %v1010_v32  ;;  %v239_v6 = vsel %vm236_vm1, %v1011_v31, %v1026_v53 }
  0xb6   : > { %v1034_v41 = vpop.permute.xlu1 %1033  ;;  %v1029_v42 = vpop.permute.xlu0 %1028  ;;  %v345_v43 = vsel %vm334_vm3, %v278_v40, %v317_v37  ;;  %v335_v58 = vsel %vm334_vm3, %v1322_v0, %v237_v48  ;;  %v337_v28 = vsel %vm334_vm3, %v1325_v1, %v239_v6  ;;  %v1084_v40 = vld [vmem:[%s1637_s1 + $0x8] sm:$0xff]  }
  0xb7   : > { %v1035_v44 = vunpack.i.l.bf16 %v1034_v41  ;;  %v1030_v45 = vunpack.i.l.bf16 %v1029_v42  ;;  %v354_v47 = vpack.c.bf16 %v345_v43, %v336_v46  ;;  %v1036_v49 = vunpack.i.h.bf16 %v1034_v41 }
  0xb8   : > { %v1031_v50 = vunpack.i.h.bf16 %v1029_v42 }
  0xb9   : > { %v277_v51 = vsel %vm276_vm2, %v1030_v45, %v1015_v36  ;;  %v316_v52 = vsel %vm315_vm0, %v1035_v44, %v1020_v30  ;;  %379 = vmatprep.subr.bf16.mxu0 %v354_v47  ;;  %v318_v2 = vsel %vm315_vm0, %v1021_v29, %v1036_v49 }
  0xba   : > { %v1044_v54 = vpop.permute.xlu1 %1043  ;;  %v1039_v55 = vpop.permute.xlu0 %1038  ;;  %v344_v56 = vsel %vm334_vm3, %v277_v51, %v316_v52  ;;  %v279_v63 = vsel %vm276_vm2, %v1016_v35, %v1031_v50 }
  0xbb   : > { %v1040_v57 = vunpack.i.l.bf16 %v1039_v55  ;;  %v1046_v59 = vunpack.i.h.bf16 %v1044_v54  ;;  %v353_v60 = vpack.c.bf16 %v344_v56, %v335_v58  ;;  %v1045_v61 = vunpack.i.l.bf16 %v1044_v54 }
  0xbc   : > { %v1041_v3 = vunpack.i.h.bf16 %v1039_v55  ;;  %v346_v16 = vsel %vm334_vm3, %v279_v63, %v318_v2 }
  0xbd   : > { %380 = vmatpush1.bf16.msra.mxu0 %v353_v60  ;;  %v240_v12 = vsel %vm236_vm1, %v1026_v53, %v1040_v57  ;;  %v281_v15 = vsel %vm276_vm2, %v1045_v61, %v1046_v59  ;;  %v280_v21 = vsel %vm276_vm2, %v1031_v50, %v1045_v61  ;;  %v355_v34 = vpack.c.bf16 %v346_v16, %v337_v28 }
  0xbe   : > { %v1054_v4 = vpop.permute.xlu1 %1053  ;;  %v1049_v5 = vpop.permute.xlu0 %1048  ;;  %v241_v23 = vsel %vm236_vm1, %v1040_v57, %v1041_v3  ;;  %v338_v26 = vsel %vm334_vm3, %v1343_v8, %v240_v12 }
  0xbf   : > { %v1055_v0 = vunpack.i.l.bf16 %v1054_v4  ;;  %v1051_v7 = vunpack.i.h.bf16 %v1049_v5  ;;  %v1050_v11 = vunpack.i.l.bf16 %v1049_v5  ;;  %v1056_v35 = vunpack.i.h.bf16 %v1054_v4 }
  0xc0   : > { %927 = vmatmul.mubr.msk.bf16.vlgmr.msra.gmra.mrb[0].mxu0 %vm372_vm4, %v1418_v62  ;;  %v339_v1 = vsel %vm334_vm3, %v1346_v9, %v241_v23 }
  0xc1   : > { %v242_v17 = vsel %vm236_vm1, %v1041_v3, %v1055_v0  ;;  %v320_v18 = vsel %vm315_vm0, %v1050_v11, %v1051_v7  ;;  %v319_v22 = vsel %vm315_vm0, %v1036_v49, %v1050_v11  ;;  %421 = vmatprep.mubr.bf16.mxu0 %v1187_v14 }
  0xc2   : > { %v308_v24 = vpop.permute.xlu1 %307  ;;  %v269_v25 = vpop.permute.xlu0 %268  ;;  %v347_v27 = vsel %vm334_vm3, %v280_v21, %v319_v22  ;;  %v348_v32 = vsel %vm334_vm3, %v281_v15, %v320_v18  ;;  %v340_v8 = vsel %vm334_vm3, %v1350_v10, %v242_v17  ;;  %v243_v10 = vsel %vm236_vm1, %v1055_v0, %v1056_v35 }
  0xc3   : > { %v321_v29 = vsel %vm315_vm0, %v1051_v7, %v308_v24  ;;  %v282_v30 = vsel %vm276_vm2, %v1046_v59, %v269_v25  ;;  %v356_v31 = vpack.c.bf16 %v347_v27, %v338_v26  ;;  %v357_v39 = vpack.c.bf16 %v348_v32, %v339_v1 }
  0xc4   : > { %v349_v33 = vsel %vm334_vm3, %v282_v30, %v321_v29  ;;  %v341_v53 = vsel %vm334_vm3, %v1359_v13, %v243_v10 }
  0xc5   : > { %432 = vmatprep.subr.bf16.mxu1 %v356_v31  ;;  %v358_v36 = vpack.c.bf16 %v349_v33, %v340_v8 }
  0xc6   : > { %v1064_v37 = vpop.permute.xlu1 %1063  ;;  %v1059_v38 = vpop.permute.xlu0 %1058  ;;  %433 = vmatpush1.bf16.msra.mxu1 %v355_v34 }
  0xc7   : > { %v1066_v41 = vunpack.i.h.bf16 %v1064_v37  ;;  %v1065_v42 = vunpack.i.l.bf16 %v1064_v37  ;;  %v1061_v43 = vunpack.i.h.bf16 %v1059_v38  ;;  %v1060_v44 = vunpack.i.l.bf16 %v1059_v38  ;;  %485 = vmatprep.subr.bf16.mxu0 %v358_v36 }
  0xc8   : > { %486 = vmatpush1.bf16.msra.mxu0 %v357_v39 }
  0xc9   : > { %v244_v45 = vsel %vm236_vm1, %v1056_v35, %v1060_v44  ;;  %929 = vmatmul.mubr.msk.bf16.vlgmr.msra.gmra.mrb[0].mxu1 %vm372_vm4, %v1418_v62  ;;  %v283_v9 = vsel %vm276_vm2, %v269_v25, %v1065_v42  ;;  %928 = vmatmul.mubr.msk.bf16.gmra.mrb[4].mxu0 %vm372_vm4, %v1084_v40  ;;  %v284_v48 = vsel %vm276_vm2, %v1065_v42, %v1066_v41 }
  0xca   : > { %v1069_v46 = vpop.permute.xlu0 %1068  ;;  %v275_v47 = vpop.permute.xlu1 %274  ;;  %474 = vmatprep.mubr.bf16.mxu1 %v1187_v14  ;;  %v245_v49 = vsel %vm236_vm1, %v1060_v44, %v1061_v43  ;;  %517 = vmatprep.mubr.bf16.mxu0 %v1187_v14  ;;  %v342_v52 = vsel %vm334_vm3, %v1381_v20, %v244_v45 }
  0xcb   : > { %v1071_v50 = vunpack.i.h.bf16 %v1069_v46  ;;  %v1070_v51 = vunpack.i.l.bf16 %v1069_v46  ;;  %v285_v56 = vsel %vm276_vm2, %v1066_v41, %v275_v47  ;;  %v343_v60 = vsel %vm334_vm3, %v1375_v19, %v245_v49 }
  0xcd   : > { %v322_v54 = vsel %vm315_vm0, %v308_v24, %v1070_v51  ;;  %v323_v55 = vsel %vm315_vm0, %v1070_v51, %v1071_v50 }
  0xce   : > { %v314_v57 = vpop.permute.xlu0 %313  ;;  %v351_v58 = vsel %vm334_vm3, %v284_v48, %v323_v55  ;;  %v350_v59 = vsel %vm334_vm3, %v283_v9, %v322_v54 }
  0xcf   : > { %v324_v61 = vsel %vm315_vm0, %v1071_v50, %v314_v57  ;;  %v360_v20 = vpack.c.bf16 %v351_v58, %v342_v52  ;;  %v359_v63 = vpack.c.bf16 %v350_v59, %v341_v53 }
  0xd0   : > { %v352_v13 = vsel %vm334_vm3, %v285_v56, %v324_v61 }
  0xd1   : > { %930 = vmatmul.mubr.msk.bf16.gmra.mrb[4].mxu1 %vm372_vm4, %v1084_v40  ;;  %538 = vmatprep.subr.bf16.mxu1 %v360_v20  ;;  %v361_v2 = vpack.c.bf16 %v352_v13, %v343_v60 }
  0xd2   : > { %539 = vmatpush1.bf16.msra.mxu1 %v359_v63  ;;  %931 = vmatmul.mubr.msk.bf16.vlgmr.msra.gmra.mrb[8].mxu0 %vm372_vm4, %v1418_v62 }
  0xd3   : > { %943 = vmatprep.subr.bf16.mxu0 %v361_v2  ;;  %570 = vmatprep.mubr.bf16.mxu1 %v1187_v14 }
  0xd4   : > { %944 = vmatpush3.bf16.msra.mxu0 %v361_v2  ;;  %527 = vmatprep.mubr.bf16.mxu0 %v1187_v14 }
  0xd9   : > { %933 = vmatmul.mubr.msk.bf16.vlgmr.msra.gmra.mrb[8].mxu1 %vm372_vm4, %v1418_v62 }
  0xda   : > { %932 = vmatmul.mubr.msk.bf16.gmra.mrb[12].mxu0 %vm372_vm4, %v1084_v40  ;;  %580 = vmatprep.mubr.bf16.mxu1 %v1187_v14 }
  0xdb   : > { %945 = vmatprep.mubr.msk.bf16.mxu0 %vm372_vm4, %v1418_v62 }
  0xe1   : > { %934 = vmatmul.mubr.msk.bf16.gmra.mrb[12].mxu1 %vm372_vm4, %v1084_v40 }
  0xe2   : > { %946 = vmatmul.mubr.msk.bf16.vlgmr.msra.gmra.mrb[16].mxu0 %vm372_vm4, %v1084_v40  ;;  %v1531_v40 = vpop.permute.xlu0 %804 }
 0x193   : > { %v1486_v19 = vpop.f32.mrb[0].mxu0 }
 0x194   : > { %v1488_v3 = vpop.f32.mrb[1].mxu0 }
 0x195   : > { %v417_v4 = vpop.f32.mrb[2].mxu0 }
 0x196   : > { %v419_v5 = vpop.f32.mrb[3].mxu0  ;;  %649 = vrot.lane.b32.xlu1 %v417_v4, %s1188_s19 }
 0x197   : > { %651 = vrot.lane.b32.xlu0 %v419_v5, %s1188_s19 }
 0x19c   : > { %v1492_v6 = vpop.f32.mrb[0].mxu1  ;;  %v423_v62 = vpop.f32.mrb[4].mxu0 }
 0x19d   : > { %v1494_v14 = vpop.f32.mrb[1].mxu1  ;;  %v425_v7 = vpop.f32.mrb[5].mxu0 }
 0x19e   : > { %v470_v0 = vpop.f32.mrb[2].mxu1  ;;  %v427_v12 = vpop.f32.mrb[6].mxu0 }
 0x19f   : > { %v472_v11 = vpop.f32.mrb[3].mxu1  ;;  %653 = vrot.lane.b32.xlu1 %v470_v0, %s1188_s19  ;;  %v429_v15 = vpop.f32.mrb[7].mxu0 }
 0x1a0   : > { %655 = vrot.lane.b32.xlu0 %v472_v11, %s1188_s19 }
 0x1a3   : > { %703 = vrot.lane.b32.xlu1 %v423_v62, %s1189_s20 }
 0x1a4   : > { %v476_v16 = vpop.f32.mrb[4].mxu1 }
 0x1a5   : > { %707 = vrot.lane.b32.xlu0 %v476_v16, %s1189_s20  ;;  %v478_v17 = vpop.f32.mrb[5].mxu1  ;;  %v1500_v18 = vpop.f32.mrb[8].mxu0 }
 0x1a6   : > { %v480_v21 = vpop.f32.mrb[6].mxu1  ;;  %v1502_v22 = vpop.f32.mrb[9].mxu0 }
 0x1a7   : > { %705 = vrot.lane.b32.xlu1 %v425_v7, %s1189_s20  ;;  %v482_v23 = vpop.f32.mrb[7].mxu1  ;;  %v523_v24 = vpop.f32.mrb[10].mxu0 }
 0x1a8   : > { %v525_v25 = vpop.f32.mrb[11].mxu0 }
 0x1a9   : > { %759 = vrot.lane.b32.xlu0 %v429_v15, %s1190_s25 }
 0x1ab   : > { %709 = vrot.lane.b32.xlu1 %v478_v17, %s1189_s20 }
 0x1ac   : > { %v1507_v26 = vpop.f32.mrb[8].mxu1 }
 0x1ad   : > { %763 = vrot.lane.b32.xlu0 %v482_v23, %s1190_s25  ;;  %v1510_v27 = vpop.f32.mrb[9].mxu1  ;;  %v529_v28 = vpop.f32.mrb[12].mxu0 }
 0x1ae   : > { %v576_v29 = vpop.f32.mrb[10].mxu1  ;;  %v531_v30 = vpop.f32.mrb[13].mxu0 }
 0x1af   : > { %757 = vrot.lane.b32.xlu1 %v427_v12, %s1190_s25  ;;  %v578_v31 = vpop.f32.mrb[11].mxu1  ;;  %v533_v32 = vpop.f32.mrb[14].mxu0 }
 0x1b0   : > { %v535_v33 = vpop.f32.mrb[15].mxu0 }
 0x1b1   : > { %659 = vrot.lane.b32.xlu0 %v525_v25, %s1188_s19 }
 0x1b3   : > { %761 = vrot.lane.b32.xlu1 %v480_v21, %s1190_s25 }
 0x1b4   : > { %v582_v34 = vpop.f32.mrb[12].mxu1 }
 0x1b5   : > { %663 = vrot.lane.b32.xlu0 %v578_v31, %s1188_s19  ;;  %v584_v8 = vpop.f32.mrb[13].mxu1  ;;  %v947_v35 = vpop.f32.mrb[16].mxu0 }
 0x1b6   : > { %v586_v36 = vpop.f32.mrb[14].mxu1  ;;  %v1516_v1 = vpop.f32.mrb[17].mxu0 }
 0x1b7   : > { %657 = vrot.lane.b32.xlu1 %v523_v24, %s1188_s19  ;;  %v588_v37 = vpop.f32.mrb[15].mxu1  ;;  %v948_v38 = vpop.f32.mrb[18].mxu0 }
 0x1b8   : > { %v628_v39 = vpop.f32.mrb[19].mxu0 }
 0x1b9   : > { %711 = vrot.lane.b32.xlu0 %v529_v28, %s1189_s20 }
 0x1bb   : > { %661 = vrot.lane.b32.xlu1 %v576_v29, %s1188_s19 }
 0x1bd   : > { %715 = vrot.lane.b32.xlu0 %v582_v34, %s1189_s20 }
 0x1bf   : > { %713 = vrot.lane.b32.xlu1 %v531_v30, %s1189_s20 }
 0x1c1   : > { %767 = vrot.lane.b32.xlu0 %v535_v33, %s1190_s25 }
 0x1c3   : > { %717 = vrot.lane.b32.xlu1 %v584_v8, %s1189_s20 }
 0x1c5   : > { %719 = vrot.lane.b32.xlu0 %v947_v35, %s1189_s20 }
 0x1c7   : > { %765 = vrot.lane.b32.xlu1 %v533_v32, %s1190_s25 }
 0x1c9   : > { %771 = vrot.lane.b32.xlu0 %v588_v37, %s1190_s25 }
 0x1cb   : > { %769 = vrot.lane.b32.xlu1 %v586_v36, %s1190_s25 }
 0x1cf   : > { %665 = vrot.lane.b32.xlu1 %v628_v39, %s1188_s19 }
 0x1d3   : > { %773 = vrot.lane.b32.xlu1 %v948_v38, %s1190_s25 }
 0x208   : > { %v650_v41 = vpop.permute.xlu1 %649 }
 0x209   : > { %v652_v42 = vpop.permute.xlu0 %651 }
 0x20a   : > { %v668_v47 = vsel %vm667_vm5, %v650_v41, %v652_v42 }
 0x20b   : > { %v685_v50 = vadd.f32 %v668_v47, %v1486_v19 }
 0x211   : > { %v654_v43 = vpop.permute.xlu1 %653 }
 0x212   : > { %v656_v44 = vpop.permute.xlu0 %655  ;;  %v669_v52 = vsel %vm667_vm5, %v652_v42, %v654_v43 }
 0x213   : > { %v670_v53 = vsel %vm667_vm5, %v654_v43, %v656_v44  ;;  %v686_v59 = vadd.f32 %v669_v52, %v1488_v3 }
 0x214   : > { %v687_v60 = vadd.f32 %v670_v53, %v1492_v6 }
 0x215   : > { %v704_v10 = vpop.permute.xlu1 %703 }
 0x217   : > { %v708_v45 = vpop.permute.xlu0 %707 }
 0x219   : > { %v706_v9 = vpop.permute.xlu1 %705 }
 0x21a   : > { %v722_v49 = vsel %vm721_vm6, %v704_v10, %v706_v9  ;;  %v723_v56 = vsel %vm721_vm6, %v706_v9, %v708_v45 }
 0x21b   : > { %v760_v46 = vpop.permute.xlu0 %759  ;;  %v739_v54 = vadd.f32 %v722_v49, %v685_v50  ;;  %v740_v63 = vadd.f32 %v723_v56, %v686_v59 }
 0x21d   : > { %v710_v48 = vpop.permute.xlu1 %709 }
 0x21e   : > { %v724_v57 = vsel %vm721_vm6, %v708_v45, %v710_v48 }
 0x21f   : > { %v764_v51 = vpop.permute.xlu0 %763  ;;  %v741_v13 = vadd.f32 %v724_v57, %v687_v60 }
 0x221   : > { %v758_v55 = vpop.permute.xlu1 %757 }
 0x222   : > { %v776_v58 = vsel %vm775_vm7, %v758_v55, %v760_v46 }
 0x223   : > { %v793_v61 = vadd.f32 %v776_v58, %v739_v54  ;;  %v660_v20 = vpop.permute.xlu0 %659 }
 0x225   : > { %v807_v2 = vadd.f32 %v1531_v40, %v793_v61  ;;  %v762_v19 = vpop.permute.xlu1 %761 }
 0x226   : > { %v777_v4 = vsel %vm775_vm7, %v760_v46, %v762_v19  ;;  %v778_v5 = vsel %vm775_vm7, %v762_v19, %v764_v51 }
 0x227   : > { %v816_v62 = vmax.f32 %v807_v2, 0.0  ;;  %v794_v0 = vadd.f32 %v777_v4, %v740_v63  ;;  %v795_v7 = vadd.f32 %v778_v5, %v741_v13  ;;  %v664_v11 = vpop.permute.xlu0 %663 }
 0x229   : > { %825 = vst [vmem:[%s1547_s27] sm:$0xff] %v816_v62  ;;  %v808_v3 = vadd.f32 %v1531_v40, %v794_v0  ;;  %v809_v6 = vadd.f32 %v1531_v40, %v795_v7  ;;  %v658_v12 = vpop.permute.xlu1 %657 }
 0x22a   : > { %v671_v25 = vsel %vm667_vm5, %v656_v44, %v658_v12  ;;  %v672_v29 = vsel %vm667_vm5, %v658_v12, %v660_v20 }
 0x22b   : > { %v817_v15 = vmax.f32 %v808_v3, 0.0  ;;  %v818_v16 = vmax.f32 %v809_v6, 0.0  ;;  %v712_v17 = vpop.permute.xlu0 %711  ;;  %v688_v30 = vadd.f32 %v671_v25, %v1494_v14  ;;  %v689_v34 = vadd.f32 %v672_v29, %v1500_v18 }
 0x22c   : > { %v725_v32 = vsel %vm721_vm6, %v710_v48, %v712_v17 }
 0x22d   : > { %826 = vst [vmem:[%s1547_s27 + $0x8] sm:$0xff] %v817_v15  ;;  %827 = vst [vmem:[%s1547_s27 + $0x10] sm:$0xff] %v818_v16  ;;  %v662_v21 = vpop.permute.xlu1 %661  ;;  %v742_v37 = vadd.f32 %v725_v32, %v688_v30 }
 0x22e   : > { %v673_v35 = vsel %vm667_vm5, %v660_v20, %v662_v21  ;;  %v674_v36 = vsel %vm667_vm5, %v662_v21, %v664_v11 }
 0x22f   : > { %v716_v23 = vpop.permute.xlu0 %715  ;;  %v690_v44 = vadd.f32 %v673_v35, %v1502_v22  ;;  %v691_v18 = vadd.f32 %v674_v36, %v1507_v26 }
 0x231   : > { %v714_v24 = vpop.permute.xlu1 %713 }
 0x232   : > { %v726_v33 = vsel %vm721_vm6, %v712_v17, %v714_v24  ;;  %v727_v41 = vsel %vm721_vm6, %v714_v24, %v716_v23 }
 0x233   : > { %v768_v28 = vpop.permute.xlu0 %767  ;;  %v743_v38 = vadd.f32 %v726_v33, %v689_v34  ;;  %v744_v9 = vadd.f32 %v727_v41, %v690_v44 }
 0x235   : > { %v718_v31 = vpop.permute.xlu1 %717 }
 0x236   : > { %v728_v42 = vsel %vm721_vm6, %v716_v23, %v718_v31 }
 0x237   : > { %v720_v8 = vpop.permute.xlu0 %719  ;;  %v745_v46 = vadd.f32 %v728_v42, %v691_v18 }
 0x238   : > { %v729_v63 = vsel %vm721_vm6, %v718_v31, %v720_v8 }
 0x239   : > { %v766_v39 = vpop.permute.xlu1 %765 }
 0x23a   : > { %v779_v14 = vsel %vm775_vm7, %v764_v51, %v766_v39  ;;  %v780_v43 = vsel %vm775_vm7, %v766_v39, %v768_v28 }
 0x23b   : > { %v796_v10 = vadd.f32 %v779_v14, %v742_v37  ;;  %v797_v45 = vadd.f32 %v780_v43, %v743_v38  ;;  %v772_v49 = vpop.permute.xlu0 %771 }
 0x23d   : > { %v810_v47 = vadd.f32 %v1531_v40, %v796_v10  ;;  %v811_v48 = vadd.f32 %v1531_v40, %v797_v45  ;;  %v770_v50 = vpop.permute.xlu1 %769 }
 0x23e   : > { %v781_v51 = vsel %vm775_vm7, %v768_v28, %v770_v50  ;;  %v782_v52 = vsel %vm775_vm7, %v770_v50, %v772_v49 }
 0x23f   : > { %v819_v53 = vmax.f32 %v810_v47, 0.0  ;;  %v820_v22 = vmax.f32 %v811_v48, 0.0  ;;  %v798_v26 = vadd.f32 %v781_v51, %v744_v9  ;;  %v799_v54 = vadd.f32 %v782_v52, %v745_v46 }
 0x241   : > { %828 = vst [vmem:[%s1547_s27 + $0x18] sm:$0xff] %v819_v53  ;;  %829 = vst [vmem:[%s1547_s27 + $0x20] sm:$0xff] %v820_v22  ;;  %v812_v55 = vadd.f32 %v1531_v40, %v798_v26  ;;  %v813_v56 = vadd.f32 %v1531_v40, %v799_v54  ;;  %v666_v57 = vpop.permute.xlu1 %665 }
 0x242   : > { %v675_v58 = vsel %vm667_vm5, %v664_v11, %v666_v57  ;;  %v693_v59 = vadd.f32 %v666_v57, %v1516_v1 }
 0x243   : > { %v821_v60 = vmax.f32 %v812_v55, 0.0  ;;  %v822_v61 = vmax.f32 %v813_v56, 0.0  ;;  %v692_v20 = vadd.f32 %v675_v58, %v1510_v27 }
 0x244   : > { %v747_v13 = vadd.f32 %v720_v8, %v693_v59 }
 0x245   : > { %830 = vst [vmem:[%s1547_s27 + $0x28] sm:$0xff] %v821_v60  ;;  %831 = vst [vmem:[%s1547_s27 + $0x30] sm:$0xff] %v822_v61  ;;  %v746_v2 = vadd.f32 %v729_v63, %v692_v20  ;;  %v774_v19 = vpop.permute.xlu1 %773 }
 0x246   : > { %v783_v4 = vsel %vm775_vm7, %v772_v49, %v774_v19  ;;  %v801_v5 = vadd.f32 %v774_v19, %v747_v13 }
 0x247   : > { %v800_v62 = vadd.f32 %v783_v4, %v746_v2 }
 0x248   : > { %v815_v1 = vadd.f32 %v1531_v40, %v801_v5 }
 0x249   : > { %v814_v27 = vadd.f32 %v1531_v40, %v800_v62 }
 0x24a   : > { %v824_v0 = vmax.f32 %v815_v1, 0.0 }
 0x24b   : > { %v823_v7 = vmax.f32 %v814_v27, 0.0 }
 0x24c   : > { %834 = vst.msk [vmem:[%s1547_s27 + $0x40] sm:$0xff] %vm833_vm8, %v824_v0 }
 0x24d   : > { %832 = vst [vmem:[%s1547_s27 + $0x38] sm:$0xff] %v823_v7 }
 0x24e   : > { %1128 = shalt.err (!%p1125_p4)
}
 0x24f   : > { %s1129_s28 = scalar_lea.hbm %s1590_s30, 1152  ;;  %s1133_s17 = scalar_lea.hbm %s1639_s3, 2304 }
 0x250   : > { %p1130_p7 = scmp.ne.s32.totalorder %s1590_s30, %s1129_s28  ;;  %p1134_p0 = scmp.lt.u32.totalorder %s1590_s30, %s1639_s3 }
 0x251   : > { %p1135_p1 = scmp.lt.u32.totalorder %s1133_s17, %s1129_s28  ;;  %p1137_p6 = scmp.lt.u32.totalorder %s1129_s28, %s1590_s30 }
 0x252   : > { %p1131_p8 = pnand %p1130_p7, %p1647_p11 }
 0x253   : > { %p1136_p3 = por %p1135_p1, %p1134_p0 }
 0x254   : > { %p1132_p9 = pneg %p1131_p8 }
 0x255   : > { %p1138_p12 = por %p1137_p6, %p1136_p3 }
 0x257   : > { %p1139_p13 = pnand %p1138_p12, %p1132_p9 }
 0x259   : > { %1142 = shalt.err (!%p1139_p13)
}
 0x25a   : > { %956 = dma.vmem_to_hbm [thread:$0]  (%p1647_p11), %s1592_s5, 1152, %s1590_s30, %s836_s16  }
 0x25b PF: > { %s862_s25 = sand.u32 1, %s1169_s12   ;;  %p1648_p5 = scmp.ne.s32.totalorder %s1643_s24, 0 }
 0x25c   : > { %p1649_p10 = scmp.ge.s32.totalorder %s1181_s15, 2  ;;  %s863_s26 = scalar_lea.sflag [#allocation4], %s862_s25 }
 0x25e   : > { %p963_p2 = pnand %p1649_p10, %p1648_p5 }
 0x260   : > { %1164 = dma.done.wait (!%p963_p2), %s863_s26, 1152  }
 0x261   : > { %1166 = vsyncadd (!%p963_p2), %s863_s26, 4294966144  ;;  %p16_p4 = scmp.ge.s32.totalorder %s1237_s18, 4   ;;  %s1650_s12 = smov %s1173_s13 }
 0x262   : > { %s1651_s13 = smov %s1177_s14  ;;  %s1652_s14 = smov %s1249_s21 }
 0x263   : > { %s1653_s15 = smov %s1237_s18  ;;  %18 = sbr.rel (!%p16_p4) target bundleno = 5 (0x5), region = 77 }
 0x26a   :  { %868 = vsyncpa [#allocation3], 1 }
 0x26b   :  { %870 = vsyncpa [#allocation3 + $0x1], 1 }
 0x26c   :  { %871 = vsyncpa [#allocation4], 1 }
 0x26d   :  { %873 = vsyncpa [#allocation4 + $0x1], 1 }

</bundles_post_ra>
